<compile_context>
chip_gen: v6e
topology: v6e:2x2x1
jax: 0.10.0
libtpu: 0.0.40
codegen_flags: <defaults>
</compile_context>

<pallas_src>
import functools

import jax
import jax.numpy as jnp
import numpy as np
from jax import lax
from jax.experimental import pallas as pl
from jax.experimental.pallas import tpu as pltpu


# --------------------------------------------------------------------------
# Small helpers: roll convention probe + generation-aware configuration.
# --------------------------------------------------------------------------
@functools.lru_cache(maxsize=None)
def _roll_sign() -> int:
    """Probe pltpu.roll's rotation convention once (guards version drift).

    Returns s such that pltpu.roll(v, (s * delta) % N, axis=-1)[n] == v[n + delta].
    """
    def probe(x_ref, o_ref):
        o_ref[...] = pltpu.roll(x_ref[...], 1, axis=1)

    x = jnp.broadcast_to(jnp.arange(128, dtype=jnp.float32), (8, 128))
    out = pl.pallas_call(
        probe, out_shape=jax.ShapeDtypeStruct((8, 128), jnp.float32))(x)
    v = float(out[0, 0])
    if v == 127.0:   # jnp.roll convention: out[i] = x[i - shift]
        return -1
    if v == 1.0:     # rotate-left convention: out[i] = x[i + shift]
        return 1
    raise RuntimeError(f"unexpected pltpu.roll semantics (probe={v})")


@functools.lru_cache(maxsize=None)
def _device_kind() -> str:
    try:
        return jax.devices()[0].device_kind.lower()
    except Exception:
        return ""


@functools.lru_cache(maxsize=None)
def _vmem_limit_bytes() -> int:
    """Generation-aware scoped-VMEM limit (~3/4 of physical, capped at 100MiB)."""
    cap = 0
    try:
        cap = int(pltpu.get_tpu_info().vmem_capacity_bytes)
    except Exception:
        cap = 0
    if cap <= 0:
        kind = _device_kind()
        # Positive evidence of a 128 MiB-VMEM part; otherwise stay conservative
        # (64 MiB assumption -> 48 MiB limit, safe on v7x).
        cap = (128 << 20) if ("v5" in kind or "v6" in kind) else (64 << 20)
    return min((cap * 3) // 4, 100 << 20)


def _default_mode() -> str:
    # v5e (and older): the slower MXU hides the concat, keep the single big
    # im2col matmul.  v6e / v7x: vst/XLU-bound -> per-tap accumulation.
    kind = _device_kind()
    return "concat" if any(f"v{v}" in kind for v in (2, 3, 4, 5)) else "tap"


def _pick_row_block(B, C, H, W, vmem_limit, min_steps=8):
    """Largest row-tile height Th | H that fits a per-lane VMEM budget, keeps
    the output lane width >= 128 when possible, and still gives >= min_steps
    grid steps for pipelining / megacore sharding."""
    # ~bytes of live working set per halo lane: f32 input (double-buffered) +
    # f32 intermediate + f32 accumulator + a few bf16 shifted copies.
    budget_lanes = max(2 * W, (vmem_limit // 2) // (28 * max(C, 1)))
    divisors = [th for th in range(1, H + 1) if H % th == 0]
    cand = [th for th in divisors if (th + 4) * W <= budget_lanes] or divisors[:1]
    lane_ok = [th for th in cand if th * W >= 128]     # lane-dense output store
    if lane_ok:
        cand = lane_ok
    deep = [th for th in cand if B * (H // th) >= min_steps]
    return max(deep) if deep else max(cand)


# --------------------------------------------------------------------------
# Kernel
# --------------------------------------------------------------------------
def _basic_block_kernel(x_ref, w1_ref, w2_ref, p_ref, o_ref, *,
                        H, W, Th, shortcut, mode, mxu_dtype, roll_sgn):
    C, N = x_ref.shape              # N = (Th + 4) * W  (halo block, lane axis)
    Cout = o_ref.shape[0]

    x = x_ref[...]                  # (C, N) f32

    # Folded per-channel params: [prelu1, bias1, prelu2, bias2]; loaded once.
    p = p_ref[...]
    a1, b1, a2, b2 = p[:, 0:1], p[:, 1:2], p[:, 2:3], p[:, 3:4]

    # ---- reflect-101 edge masks, shape (1, N), shared by both convs --------
    t_idx = pl.program_id(1)                               # row-tile index
    lane = lax.broadcasted_iota(jnp.int32, (1, N), 1)
    col = lane % W
    orow = lane // W + (t_idx * Th - 2)                    # row in image coords
    x_lo, x_hi = col == 0, col == W - 1
    y_lo, y_hi = orow == 0, orow == H - 1

    def read_from(v, delta):
        # Value at flattened index n + delta (wrapped positions are masked or
        # land in unused halo rows).
        return pltpu.roll(v, (roll_sgn * delta) % N, axis=1)

    def taps(t):
        # t: (C, N), already mxu_dtype.  Returns the 9 shifted tap tensors in
        # (ky, kx) row-major order with reflect fix-ups at TRUE image edges;
        # interior tile seams are covered by the 2-row halo.
        t_m1, t_p1 = read_from(t, -1), read_from(t, 1)
        left = jnp.where(x_lo, t_p1, t_m1)                 # value at (y, x-1)
        right = jnp.where(x_hi, t_m1, t_p1)                # value at (y, x+1)
        cols = (left, t, right)
        ups, dns = [], []
        for v in cols:
            v_m, v_p = read_from(v, -W), read_from(v, W)
            ups.append(jnp.where(y_lo, v_p, v_m))          # value at (y-1, .)
            dns.append(jnp.where(y_hi, v_m, v_p))          # value at (y+1, .)
        return list(ups) + list(cols) + list(dns)          # ky = 0, 1, 2 rows

    def conv3x3(t_act, w_ref, bias):
        t = t_act.astype(mxu_dtype)        # cast BEFORE rolls / edge selects
        tp = taps(t)
        if mode == "concat":
            # Single im2col matmul: (Cout, 9C) x (9C, N), f32 accumulate.
            patch = jnp.concatenate(tp, axis=0)
            out = jnp.dot(w_ref[...], patch, preferred_element_type=jnp.float32)
        else:
            # Per-tap accumulation: 9 x (Cout, C) x (C, N); no patch tensor.
            w = w_ref[...]                                 # (9, Cout, C)
            out = jnp.dot(w[0], tp[0], preferred_element_type=jnp.float32)
            for k in range(1, 9):
                out = out + jnp.dot(w[k], tp[k],
                                    preferred_element_type=jnp.float32)
        return out + bias

    t1 = jnp.where(x >= 0, x, a1 * x)                      # PReLU1
    o1 = conv3x3(t1, w1_ref, b1)
    t2 = jnp.where(o1 >= 0, o1, a2 * o1)                   # PReLU2
    o2 = conv3x3(t2, w2_ref, b2)

    lo, hi = 2 * W, (Th + 2) * W                           # drop halo rows
    res = o2[:, lo:hi]
    if shortcut:
        res = res + x[:, lo:hi]
    o_ref[...] = res.astype(o_ref.dtype)                   # lane-dense store


# --------------------------------------------------------------------------
# Wrapper
# --------------------------------------------------------------------------
def basic_block(x, w1, b1, a1, w2, b2, a2, *, shortcut=True, row_block=None,
                mode="auto", mxu_dtype=jnp.bfloat16):
    """x: (B, C, H, W) f32; w*: (C, C, 3, 3); b*: (C,); a*: (C,) PReLU slopes."""
    B, C, H, W = x.shape
    Cout = w1.shape[0]
    assert w1.shape == (Cout, C, 3, 3) and w2.shape == (Cout, C, 3, 3)
    assert Cout == C, "ResCNet BasicBlock uses planes == inplanes"

    vmem_limit = _vmem_limit_bytes()
    if mode == "auto":
        mode = _default_mode()
    assert mode in ("tap", "concat")

    Th = row_block if row_block is not None else _pick_row_block(
        B, C, H, W, vmem_limit)
    assert H % Th == 0, f"row_block {Th} must divide H={H}"
    nt = H // Th
    Nb = (Th + 4) * W                      # halo block lane extent

    # ---- halo-augmented, channel-major, lane-dense activation tiles --------
    # Tile t needs image rows [t*Th - 2, t*Th + Th + 2); out-of-image halo rows
    # are edge-padded junk that never reaches the output (masked in-kernel).
    xp = jnp.pad(x, ((0, 0), (0, 0), (2, 2), (0, 0)), mode="edge")
    ridx = jnp.arange(nt)[:, None] * Th + jnp.arange(Th + 4)[None, :]
    x_tiles = xp[:, :, ridx, :]                            # (B, C, nt, Th+4, W)
    x_tiles = jnp.transpose(x_tiles, (0, 2, 1, 3, 4)).reshape(B, nt, C, Nb)

    # ---- weight / param repack ----------------------------------------------
    if mode == "concat":
        # (Cout, Cin, 3, 3) -> (Cout, 9*Cin), K index = (ky*3+kx)*Cin + cin.
        w1k = jnp.transpose(w1, (0, 2, 3, 1)).reshape(Cout, 9 * C).astype(mxu_dtype)
        w2k = jnp.transpose(w2, (0, 2, 3, 1)).reshape(Cout, 9 * C).astype(mxu_dtype)
        wshape = (Cout, 9 * C)
    else:
        # (Cout, Cin, 3, 3) -> (9, Cout, Cin), tap index = ky*3 + kx.
        w1k = jnp.transpose(w1, (2, 3, 0, 1)).reshape(9, Cout, C).astype(mxu_dtype)
        w2k = jnp.transpose(w2, (2, 3, 0, 1)).reshape(9, Cout, C).astype(mxu_dtype)
        wshape = (9, Cout, C)
    params = jnp.stack([a1, b1, a2, b2], axis=1).astype(jnp.float32)   # (C, 4)

    # Grid-invariant operands: tiny, so default double buffering is harmless
    # (pipeline_mode=pl.Buffered(1) could shave a little VMEM at large C).
    wconst = pl.BlockSpec(wshape, lambda b, t: (0,) * len(wshape))

    kernel = functools.partial(
        _basic_block_kernel, H=H, W=W, Th=Th, shortcut=shortcut, mode=mode,
        mxu_dtype=mxu_dtype, roll_sgn=_roll_sign())

    out = pl.pallas_call(
        kernel,
        out_shape=jax.ShapeDtypeStruct((B, nt, Cout, Th * W), x.dtype),
        grid_spec=pltpu.PrefetchScalarGridSpec(
            num_scalar_prefetch=0,
            grid=(B, nt),
            in_specs=[
                pl.BlockSpec((None, None, C, Nb), lambda b, t: (b, t, 0, 0)),
                wconst,
                wconst,
                pl.BlockSpec((C, 4), lambda b, t: (0, 0)),
            ],
            out_specs=pl.BlockSpec((None, None, Cout, Th * W),
                                   lambda b, t: (b, t, 0, 0)),
        ),
        compiler_params=pltpu.CompilerParams(
            dimension_semantics=("parallel", "parallel"),
            vmem_limit_bytes=vmem_limit,
        ),
    )(x_tiles, w1k, w2k, params)

    out = out.reshape(B, nt, Cout, Th, W)
    return jnp.transpose(out, (0, 2, 1, 3, 4)).reshape(B, Cout, H, W)


# --------------------------------------------------------------------------
# Pure-JAX reference (matches the PyTorch BasicBlock forward).
# --------------------------------------------------------------------------
def _reference(x, w1, b1, a1, w2, b2, a2, shortcut=True):
    def prelu(v, a):
        return jnp.where(v >= 0, v, a[None, :, None, None] * v)

    def conv(v, w, b):
        v = jnp.pad(v, ((0, 0), (0, 0), (1, 1), (1, 1)), mode="reflect")
        out = lax.conv_general_dilated(
            v, w, window_strides=(1, 1), padding="VALID",
            dimension_numbers=("NCHW", "OIHW", "NCHW"))
        return out + b[None, :, None, None]

    t = conv(prelu(x, a1), w1, b1)
    t = conv(prelu(t, a2), w2, b2)
    return x + t if shortcut else t


if __name__ == "__main__":
    B, C, H, W = 2, 4, 16, 16
    key = jax.random.PRNGKey(0)
    k_x, k_w1, k_b1, k_w2, k_b2 = jax.random.split(key, 5)

    x = jax.random.normal(k_x, (B, C, H, W), dtype=jnp.float32)
    w1 = jax.random.normal(k_w1, (C, C, 3, 3), dtype=jnp.float32) * 0.1
    b1 = jax.random.normal(k_b1, (C,), dtype=jnp.float32) * 0.1
    w2 = jax.random.normal(k_w2, (C, C, 3, 3), dtype=jnp.float32) * 0.1
    b2 = jax.random.normal(k_b2, (C,), dtype=jnp.float32) * 0.1
    a1 = jnp.full((C,), 0.1, dtype=jnp.float32)   # PReLU init 0.1 per channel
    a2 = jnp.full((C,), 0.1, dtype=jnp.float32)

    ref = jax.block_until_ready(_reference(x, w1, b1, a1, w2, b2, a2))
    ref_ns = jax.block_until_ready(
        _reference(x, w1, b1, a1, w2, b2, a2, shortcut=False))

    # f32 MXU, per-tap accumulation, 2 row tiles / image (exercises halo seams).
    out = jax.block_until_ready(basic_block(
        x, w1, b1, a1, w2, b2, a2, mode="tap", row_block=8,
        mxu_dtype=jnp.float32))
    np.testing.assert_allclose(np.asarray(out), np.asarray(ref),
                               rtol=1e-4, atol=1e-4)

    # f32 MXU, im2col-concat form (v5e path), single tile per image.
    out = jax.block_until_ready(basic_block(
        x, w1, b1, a1, w2, b2, a2, mode="concat", row_block=16,
        mxu_dtype=jnp.float32))
    np.testing.assert_allclose(np.asarray(out), np.asarray(ref),
                               rtol=1e-4, atol=1e-4)

    # f32, 4 row tiles (more seams) and no residual shortcut (first block).
    out = jax.block_until_ready(basic_block(
        x, w1, b1, a1, w2, b2, a2, shortcut=False, mode="tap", row_block=4,
        mxu_dtype=jnp.float32))
    np.testing.assert_allclose(np.asarray(out), np.asarray(ref_ns),
                               rtol=1e-4, atol=1e-4)

    # bf16-fed MXU fast path, auto mode / auto row-block (production config).
    out = jax.block_until_ready(basic_block(x, w1, b1, a1, w2, b2, a2))
    assert out.shape == (B, C, H, W)
    np.testing.assert_allclose(np.asarray(out), np.asarray(ref),
                               rtol=5e-2, atol=5e-2)

    print("KERNEL_OK")
</pallas_src>

<mosaic_0001>
module attributes {stable_mosaic.version = 11 : i64} {
  func.func @probe(%arg0: memref<8x128xf32, #tpu.memory_space<vmem>>, %arg1: memref<8x128xf32, #tpu.memory_space<vmem>>) attributes {dimension_semantics = [], scalar_prefetch = 0 : i64, scratch_operands = 0 : i64, tpu.core_type = #tpu.core_type<tc>} {
    %c0 = arith.constant 0 : index
    %c0_0 = arith.constant 0 : index
    %0 = vector.load %arg0[%c0, %c0_0] : memref<8x128xf32, #tpu.memory_space<vmem>>, vector<8x128xf32>
    %c1_i32 = arith.constant 1 : i32
    %1 = tpu.dynamic_rotate %0 by %c1_i32 dim 1 : vector<8x128xf32>, i32 -> vector<8x128xf32>
    %c0_1 = arith.constant 0 : index
    %c0_2 = arith.constant 0 : index
    %2 = vector.load %arg1[%c0_1, %c0_2] : memref<8x128xf32, #tpu.memory_space<vmem>>, vector<8x128xf32>
    tpu.vector_store %arg1[%c0_1, %c0_2], %1 {strides = array<i32>} : memref<8x128xf32, #tpu.memory_space<vmem>>, vector<8x128xf32>,
    return
  }
}

</mosaic_0001>

<bundles_post_ra>
// kernel: tpu_custom_call.1
= control target key start
LH: loop header
LB: loop body
LE: loop exit
PB: predicated region body
PF: predicated region fallthrough
CT: control target
= control target key end

     0   :  { %6 = vsyncpa [#allocation3], 0  ;;  %s106_s0 = inlined_call_operand.hbm [shape: f32[8,128], index: 0, kind: input, shape index: {}]   ;;  %s107_s1 = inlined_call_operand.hbm [shape: f32[8,128], index: 1, kind: output, shape index: {}]  }
   0x1   :  { %7 = vsyncpa [#allocation4], 0  ;;  %s87_s6 = smov [#allocation2]  }
   0x2   :  { %s14_s7 = sshll.u32 %s87_s6, 4  ;;  %s15_s7 = int_to_ptr.vmem [resolvable:$true] %s14_s7 }
   0x3   :  { %s51_s8 = scalar_lea.vmem %s15_s7, 128  ;;  %p56_p1 = scmp.lt.s32.totalorder %s15_s7, %s15_s7 }
   0x4   :  { %p52_p0 = scmp.ne.s32.totalorder %s15_s7, %s51_s8  ;;  %p57_p2 = scmp.lt.s32.totalorder %s51_s8, %s51_s8 }
   0x6   :  { %p58_p3 = por %p57_p2, %p56_p1 }
   0x8   :  { %p59_p4 = pnand %p58_p3, %p52_p0 }
   0xa   :  { %62 = shalt.err (!%p59_p4)
}
   0xb   :  { %17 = dma.hbm_to_vmem [thread:$0]  %s106_s0, 128, %s15_s7, [#allocation3]  }
   0xc   :  { %83 = dma.done.wait [#allocation3], 128  }
   0xd   :  { %84 = vsyncadd [#allocation3], 4294967168  ;;  %v21_v0 = vld [vmem:[#allocation2] sm:$0xff]  ;;  %s88_s11 = smov 1   ;;  %s89_s12 = smov [#allocation5]  }
   0xe   :  { %22 = vrot.lane.b32.xlu0 %v21_v0, %s88_s11  ;;  %s31_s13 = sshll.u32 %s89_s12, 4  ;;  %s32_s13 = int_to_ptr.vmem [resolvable:$true] %s31_s13 }
   0xf   :  { %s63_s14 = scalar_lea.vmem %s32_s13, 128  ;;  %p68_p6 = scmp.lt.s32.totalorder %s32_s13, %s32_s13 }
  0x10   :  { %p64_p5 = scmp.ne.s32.totalorder %s32_s13, %s63_s14  ;;  %p69_p7 = scmp.lt.s32.totalorder %s63_s14, %s63_s14 }
  0x12   :  { %p70_p8 = por %p69_p7, %p68_p6 }
  0x14   :  { %p71_p9 = pnand %p70_p8, %p64_p5 }
  0x80   :  { %v23_v1 = vpop.permute.xlu0 %22 }
  0x81   :  { %24 = vst [vmem:[#allocation5] sm:$0xff] %v23_v1 }
  0x82   :  { %74 = shalt.err (!%p71_p9)
}
  0x83   :  { %34 = dma.vmem_to_hbm [thread:$0]  %s32_s13, 128, %s107_s1, [#allocation4]  }
  0x84   :  { %85 = dma.done.wait [#allocation4], 128  }
  0x85   :  { %86 = vsyncadd [#allocation4], 4294967168 }
  0x86   :  { %38 = vsyncpa [#allocation3], 1 }
  0x87   :  { %39 = vsyncpa [#allocation4], 1 }

</bundles_post_ra>
